<compile_context>
chip_gen: v5e
topology: v5e:2x2
jax: 0.10.0
libtpu: 0.0.40
codegen_flags: <defaults>
</compile_context>

<pallas_src>
import functools

import jax
import jax.numpy as jnp
from jax.experimental import pallas as pl
from jax.experimental.pallas import tpu as pltpu


def _round_up(x, m):
    return ((x + m - 1) // m) * m


def _choose_tile_e(e_pad, cap=1024):
    """Largest multiple of 128 <= cap that divides e_pad (128 always works)."""
    t = max(128, (min(cap, e_pad) // 128) * 128)
    while e_pad % t != 0:
        t -= 128
    return t


def _choose_tile_m(m, target=1024):
    """Multiple of 8; prefers >=2 grid steps (v7x dual TC) and dividing M."""
    m8 = _round_up(max(m, 1), 8)
    tile = min(_round_up(target, 8), m8)
    if tile >= m8 and m8 >= 16:            # force >=2 M steps when possible
        tile = _round_up(m8 // 2, 8)
        if tile * 2 < m8:
            tile = _round_up((m8 + 1) // 2, 8)
    if m % tile != 0:                      # prefer a divisor of M (no padding,
        t = tile                           # no epilogue slice copy)
        while t >= 8 and t >= tile // 2:
            if m % t == 0:
                return t
            t -= 8
    return tile


def _embed_kernel(x_ref, w_ref, b_ref, o_ref):
    # x_ref: [tile_m, K_pad] (bf16/f32 stream), w_ref: [K_pad, tile_e] (resident
    # across the inner M sweep), b_ref: [1, tile_e] f32.
    acc = jnp.dot(x_ref[...], w_ref[...], preferred_element_type=jnp.float32)
    o_ref[...] = (acc + b_ref[...]).astype(o_ref.dtype)


def prepare_params(weight, bias, compute_dtype=jnp.bfloat16):
    """One-time parameter prep (call once, outside the per-step jitted path).

    weight: [E, K] (PyTorch nn.Linear layout, K = s1*s2*C)
    bias:   [E]
    returns (w_prepared [K_pad, E_pad] compute_dtype, b_prepared [1, E_pad] f32)
    """
    E, K = weight.shape
    K_pad = _round_up(K, 128)   # lane-aligned contraction; 256 would only add DMA bytes
    E_pad = _round_up(E, 128)
    w_t = jnp.asarray(weight).T.astype(compute_dtype)          # [K, E]
    w_p = jnp.pad(w_t, ((0, K_pad - K), (0, E_pad - E)))        # zero pad: exact
    b_p = jnp.pad(jnp.asarray(bias, jnp.float32), (0, E_pad - E)).reshape(1, E_pad)
    return w_p, b_p


def line_patch_embedding(images, w_prepared, b_prepared, *, patch_size, embed_dim,
                         tile_m=None, tile_e=None, out_dtype=None):
    """images: [B, C, H, W] -> features: [B, h*w, embed_dim]."""
    B, C, H, W = images.shape
    s1, s2 = patch_size
    h, w = H // s1, W // s2
    K = s1 * s2 * C
    M = B * h * w
    E = embed_dim
    K_pad, E_pad = w_prepared.shape
    assert K <= K_pad and E <= E_pad
    cdt = w_prepared.dtype                      # compute/stream dtype (bf16 default)
    out_dtype = images.dtype if out_dtype is None else out_dtype

    # Patch rearrange 'b c (h s1) (w s2) -> (b h w) (s1 s2 c)': a pure index
    # shuffle.  Cast to the compute dtype BEFORE the transpose so the single
    # XLA relayout pass reads f32 once and writes bf16 (half the intermediate
    # bytes and half the kernel's streamed input DMA).  The pad fuses into it.
    # TODO(synk): fold this rearrange into the kernel (per-(b,h) image blocks
    # reshuffled in VMEM) once Mosaic's general >2-D relayout lowering is
    # confirmed on the target jax version; that removes this HBM pass entirely.
    x = images.astype(cdt).reshape(B, C, h, s1, w, s2)
    x = jnp.transpose(x, (0, 2, 4, 3, 5, 1)).reshape(M, K)

    # ---- tile selection -----------------------------------------------------
    tile_e = _choose_tile_e(E_pad, cap=(tile_e or 1024))
    if tile_m is None:
        tile_m = _choose_tile_m(M, target=2048 if K_pad <= 256 else 1024)
    tile_m = max(8, _round_up(min(tile_m, _round_up(M, 8)), 8))

    in_sz = jnp.dtype(cdt).itemsize
    out_sz = jnp.dtype(out_dtype).itemsize

    def vmem_needed(tm):
        # Honest accounting: Pallas double-buffers every operand (including the
        # "resident" weight/bias — constant index_map skips re-DMA, not the 2nd
        # buffer).  Bias row is sublane-padded to 8.
        return 2 * (tm * K_pad * in_sz            # x tiles
                    + K_pad * tile_e * in_sz      # weight tile
                    + 8 * tile_e * 4              # bias (f32)
                    + tm * tile_e * out_sz)       # out tiles

    budget = 40 << 20   # conservative: fits v7x's 64 MiB/TC with compiler headroom
    while vmem_needed(tile_m) > budget and tile_m > 256:
        tile_m = max(256, _round_up(tile_m // 2, 8))

    M_pad = _round_up(M, tile_m)
    x_p = jnp.pad(x, ((0, M_pad - M), (0, K_pad - K)))   # zero pad: exact matmul

    # E axis OUTER so each weight tile stays resident across the whole M sweep;
    # M axis inner streams x / out tiles.  Both axes are independent ("parallel").
    grid = (E_pad // tile_e, M_pad // tile_m)
    vmem_limit = int(min(max(vmem_needed(tile_m) + (4 << 20), 16 << 20), 100 << 20))

    out = pl.pallas_call(
        _embed_kernel,
        out_shape=jax.ShapeDtypeStruct((M_pad, E_pad), out_dtype),
        grid_spec=pltpu.PrefetchScalarGridSpec(
            num_scalar_prefetch=0,
            grid=grid,
            in_specs=[
                pl.BlockSpec((tile_m, K_pad), lambda e, m: (m, 0)),   # x: streamed
                pl.BlockSpec((K_pad, tile_e), lambda e, m: (0, e)),   # W: resident per e
                pl.BlockSpec((1, tile_e), lambda e, m: (0, e)),       # bias
            ],
            out_specs=pl.BlockSpec((tile_m, tile_e), lambda e, m: (m, e)),
        ),
        compiler_params=pltpu.CompilerParams(
            dimension_semantics=("parallel", "parallel"),
            vmem_limit_bytes=vmem_limit,
        ),
    )(x_p, w_prepared, b_prepared)

    if M_pad == M and E_pad == E:          # free metadata reshape, no copy
        return out.reshape(B, h * w, E)
    return out[:M, :E].reshape(B, h * w, E)


if __name__ == "__main__":
    # Small deterministic example: B=2, C=4, H=W=16, patch=(4,4), embed=32
    B, C, H, W = 2, 4, 16, 16
    patch_size = (4, 4)
    E = 32
    K = patch_size[0] * patch_size[1] * C

    key = jax.random.PRNGKey(0)
    k_img, k_w, k_b = jax.random.split(key, 3)

    images = jax.random.normal(k_img, (B, C, H, W), dtype=jnp.float32)

    # Deterministic PyTorch-style init: uniform(-1/sqrt(K), 1/sqrt(K))
    bound = 1.0 / (K ** 0.5)
    weight = jax.random.uniform(k_w, (E, K), minval=-bound, maxval=bound,
                                dtype=jnp.float32)
    bias = jax.random.uniform(k_b, (E,), minval=-bound, maxval=bound,
                              dtype=jnp.float32)

    # One-time weight/bias prep (outside the per-call jitted path), bf16 stream.
    w_prep, b_prep = prepare_params(weight, bias, compute_dtype=jnp.bfloat16)

    fn = jax.jit(functools.partial(line_patch_embedding,
                                   patch_size=patch_size, embed_dim=E))
    out = jax.block_until_ready(fn(images, w_prep, b_prep))

    # References: precision-matched (bf16 inputs, f32 accumulation) and a loose
    # f32 sanity check.
    s1, s2 = patch_size
    h, w = H // s1, W // s2
    xr = images.reshape(B, C, h, s1, w, s2)
    xr = jnp.transpose(xr, (0, 2, 4, 3, 5, 1)).reshape(B, h * w, K)
    ref_bf16 = jnp.dot(xr.astype(jnp.bfloat16), weight.T.astype(jnp.bfloat16),
                       preferred_element_type=jnp.float32) + bias
    ref_f32 = xr @ weight.T + bias

    assert out.shape == (B, h * w, E)
    assert out.dtype == images.dtype
    assert jnp.allclose(out, ref_bf16, atol=2e-3, rtol=2e-3)
    assert jnp.allclose(out, ref_f32, atol=1e-1, rtol=1e-1)   # bf16-stream sanity
    print("KERNEL_OK")
</pallas_src>

<mosaic_0001>
module attributes {stable_mosaic.version = 11 : i64} {
  func.func @_embed_kernel(%arg0: i32, %arg1: i32, %arg2: memref<16x128xbf16, #tpu.memory_space<vmem>>, %arg3: memref<128x128xbf16, #tpu.memory_space<vmem>>, %arg4: memref<1x128xf32, #tpu.memory_space<vmem>>, %arg5: memref<16x128xf32, #tpu.memory_space<vmem>>) attributes {dimension_semantics = [#tpu.dimension_semantics<parallel>, #tpu.dimension_semantics<parallel>], iteration_bounds = array<i64: 1, 2>, scalar_prefetch = 0 : i64, scratch_operands = 0 : i64, tpu.core_type = #tpu.core_type<tc>, window_params = [{transform_indices = @transform_0, window_bounds = array<i64: 16, 128>}, {transform_indices = @transform_1, window_bounds = array<i64: 128, 128>}, {transform_indices = @transform_2, window_bounds = array<i64: 1, 128>}, {transform_indices = @transform_3, window_bounds = array<i64: 16, 128>}]} {
    %c0 = arith.constant 0 : index
    %c0_0 = arith.constant 0 : index
    %0 = vector.load %arg2[%c0, %c0_0] : memref<16x128xbf16, #tpu.memory_space<vmem>>, vector<16x128xbf16>
    %c0_1 = arith.constant 0 : index
    %c0_2 = arith.constant 0 : index
    %1 = vector.load %arg3[%c0_1, %c0_2] : memref<128x128xbf16, #tpu.memory_space<vmem>>, vector<128x128xbf16>
    %cst = arith.constant dense<0.000000e+00> : vector<16x128xf32>
    %2 = tpu.matmul %0, %1, %cst {dimension_numbers = #tpu.dot_dimension_numbers<[1], [0], [0], [1], [0, 0, 1, 1], [], []>} : vector<16x128xbf16>, vector<128x128xbf16>, vector<16x128xf32> -> vector<16x128xf32>
    %c0_3 = arith.constant 0 : index
    %c0_4 = arith.constant 0 : index
    %3 = vector.load %arg4[%c0_3, %c0_4] : memref<1x128xf32, #tpu.memory_space<vmem>>, vector<1x128xf32>
    %4 = vector.broadcast %3 : vector<1x128xf32> to vector<16x128xf32>
    %5 = arith.addf %2, %4 : vector<16x128xf32>
    %c0_5 = arith.constant 0 : index
    %c0_6 = arith.constant 0 : index
    %6 = vector.load %arg5[%c0_5, %c0_6] : memref<16x128xf32, #tpu.memory_space<vmem>>, vector<16x128xf32>
    tpu.vector_store %arg5[%c0_5, %c0_6], %5 {strides = array<i32>} : memref<16x128xf32, #tpu.memory_space<vmem>>, vector<16x128xf32>,
    return
  }
  func.func @transform_0(%arg0: i32, %arg1: i32) -> (i32, i32) {
    %c0_i32 = arith.constant 0 : i32
    %c0_i32_0 = arith.constant 0 : i32
    return %arg1, %c0_i32 : i32, i32
  }
  func.func @transform_1(%arg0: i32, %arg1: i32) -> (i32, i32) {
    %c0_i32 = arith.constant 0 : i32
    %c0_i32_0 = arith.constant 0 : i32
    return %c0_i32, %arg0 : i32, i32
  }
  func.func @transform_2(%arg0: i32, %arg1: i32) -> (i32, i32) {
    %c0_i32 = arith.constant 0 : i32
    %c0_i32_0 = arith.constant 0 : i32
    return %c0_i32, %arg0 : i32, i32
  }
  func.func @transform_3(%arg0: i32, %arg1: i32) -> (i32, i32) {
    %c0_i32 = arith.constant 0 : i32
    return %arg1, %arg0 : i32, i32
  }
}

</mosaic_0001>

<bundles_post_ra>
// kernel: line_patch_embedding.1
= control target key start
LH: loop header
LB: loop body
LE: loop exit
PB: predicated region body
PF: predicated region fallthrough
CT: control target
= control target key end

     0   :  { %8 = vsyncpa [#allocation3], 0  ;;  %s769_s0 = inlined_call_operand.vmem [shape: bf16[32,128], index: 0, kind: input, shape index: {}]   ;;  %s770_s1 = inlined_call_operand.vmem [shape: bf16[128,128], index: 1, kind: input, shape index: {}]   ;;  %s771_s2 = inlined_call_operand.vmem [shape: f32[1,128], index: 2, kind: input, shape index: {}]   ;;  %s772_s3 = inlined_call_operand.hbm [shape: f32[32,128], index: 3, kind: output, shape index: {}]  }
   0x1   :  { %10 = vsyncpa [#allocation3 + $0x1], 0  ;;  %s646_s12 = smov 0   ;;  %s648_s13 = smov 0  }
   0x2   :  { %s650_s14 = smov 0   ;;  %s652_s15 = smov 0  }
   0x3   :  { %s654_s16 = smov 0   ;;  %s656_s17 = smov 0  }
   0x4 LB: > { %s425_s18 = sadd.s32 4294967295, %s622_s17   ;;  %s426_s19 = sadd.s32 4294967294, %s622_s17   ;;  %s622_s17 = sphi %s656_s17, %s16_s17   ;;  %s618_s16 = sphi %s654_s16, %s779_s16   ;;  %s614_s15 = sphi %s652_s15, %s778_s15   ;;  %s610_s14 = sphi %s650_s14, %s777_s14   ;;  %s606_s13 = sphi %s648_s13, %s776_s13   ;;  %s602_s12 = sphi %s646_s12, %s775_s12  }
   0x5   : > { %s25_s20 = sadd.s32 1, %s618_s16  ;;  %s115_s21 = sadd.s32 1, %s610_s14 }
   0x6   : > { %p26_p0 = scmp.ge.s32.totalorder %s25_s20, 2  ;;  %p125_p1 = scmp.ne.s32.totalorder %s610_s14, %s606_s13 }
   0x7   : > { %p126_p2 = scmp.eq.s32.totalorder %s425_s18, 1  ;;  %p131_p3 = scmp.ne.s32.totalorder %s606_s13, %s602_s12 }
   0x8   : > { %s781_s20 = smov (%p26_p0, %s25_s20), 0  ;;  %p132_p5 = scmp.eq.s32.totalorder %s426_s19, 1 }
   0x9   : > { %p686_p4 = por %p126_p2, %p125_p1  ;;  %s110_s23 = ssub.s32 %s618_s16, %s781_s20 }
   0xa   : > { %p431_p6 = scmp.ge.s32.totalorder %s622_s17, 1  ;;  %p113_p7 = scmp.eq.s32.totalorder %s110_s23, 0 }
   0xb   : > { %p693_p8 = por %p132_p5, %p131_p3  ;;  %p172_p9 = scmp.lt.s32.totalorder %s622_s17, 3 }
   0xc   : > { %s699_s25 = scalar_select %p113_p7, %s610_s14, %s115_s21  }
   0xd   : > { %p173_p10 = pnand %p431_p6, %p172_p9 }
   0xe   : > { %s433_s7 = sshll.u32 (!%p173_p10), %s614_s15, 1  ;;  %s200_s30 = sand.u32 (!%p173_p10), 1, %s606_s13  }
   0xf   : > { %176 = sbr.rel (%p173_p10) target bundleno = 192 (0xc0), region = 32  ;;  %p204_p11 = scmp.lt.s32.totalorder (!%p173_p10), %s433_s7, 3 }
  0x10   : > { %s432_s4 = sshll.u32 (!%p173_p10), %s200_s30, 4  ;;  %s485_s8 = sshll.u32 (!%p173_p10), %s614_s15, 4 }
  0x11   : > { %s322_s10 = scalar_lea.hbm (!%p173_p10), %s772_s3, %s485_s8  ;;  %s202_s11 = scalar_lea.vmem (!%p173_p10), [#allocation2], %s432_s4 }
  0x12   : > { %s323_s18 = sshll.u32 (!%p173_p10), %s202_s11, 4  ;;  %s325_s19 = sshll.u32 (!%p173_p10), %s322_s10, 4  ;;  %s324_s18 = int_to_ptr.vmem [resolvable:$true] %s323_s18  ;;  %s326_s19 = int_to_ptr.hbm [resolvable:$true] %s325_s19 }
  0x13   : > { %s558_s23 = sshra.s32 (!%p173_p10), %s326_s19, 4  ;;  %s564_s28 = scalar_lea.hbm (!%p173_p10), %s772_s3, 32  ;;  %s559_s23 = int_to_ptr.hbm [resolvable:$true] %s558_s23 }
  0x14   : > { %v484_v0 = vld [vmem:[%s770_s1 + $0x38] sm:$0xff]  ;;  %v483_v1 = vld [vmem:[%s770_s1 + $0x30] sm:$0xff]  ;;  %v482_v2 = vld [vmem:[%s770_s1 + $0x28] sm:$0xff]  ;;  %s783_s7 = smov (!%p204_p11, %s433_s7), 3  ;;  %s560_s15 = scalar_lea.hbm %s559_s23, 16 }
  0x15   : > { %293 = vmatpush.bf16.msra.mxu0 %v484_v0  ;;  %v481_v3 = vld [vmem:[%s770_s1 + $0x20] sm:$0xff]  ;;  %v480_v4 = vld [vmem:[%s770_s1 + $0x18] sm:$0xff]  ;;  %v479_v5 = vld [vmem:[%s770_s1 + $0x10] sm:$0xff]  ;;  %s434_s21 = sshll.u32 %s783_s7, 2  ;;  %p561_p12 = scmp.ne.s32.totalorder %s559_s23, %s560_s15 }
  0x16   : > { %v478_v6 = vld [vmem:[%s770_s1 + $0x8] sm:$0xff]  ;;  %v477_v7 = vld [vmem:[%s770_s1] sm:$0xff]  ;;  %s207_s29 = scalar_lea.vmem %s769_s0, %s434_s21  ;;  %s310_s21 = scalar_lea.sflag [#allocation3], %s200_s30 }
  0x17   : > { %v476_v8 = vld [vmem:[%s207_s29] sm:$0xff]  ;;  %p562_p13 = pnand %p561_p12, %p686_p4  ;;  %p565_p1 = scmp.lt.s32.totalorder %s559_s23, %s772_s3 }
  0x18   : > { %v543_v9 = vld [vmem:[%s771_s2] ss:$0 sm:$0xff]  ;;  %p566_p2 = scmp.lt.s32.totalorder %s564_s28, %s560_s15 }
  0x19   : > { %294 = vmatpush.bf16.msra.mxu0 %v483_v1  ;;  %p563_p0 = pneg %p562_p13 }
  0x1a   : > { %p567_p3 = por %p566_p2, %p565_p1 }
  0x1c   : > { %p568_p5 = pnand %p567_p3, %p563_p0 }
  0x1d   : > { %295 = vmatpush.bf16.msra.mxu0 %v482_v2 }
  0x21   : > { %296 = vmatpush.bf16.msra.mxu0 %v481_v3 }
  0x25   : > { %297 = vmatpush.bf16.msra.mxu0 %v480_v4 }
  0x29   : > { %298 = vmatpush.bf16.msra.mxu0 %v479_v5 }
  0x2d   : > { %299 = vmatpush.bf16.msra.mxu0 %v478_v6 }
  0x31   : > { %300 = vmatpush.bf16.msra.mxu0 %v477_v7 }
  0x34   : > { %301 = vmatmul.bf16.vlgmr.msra.gmra.mxu0 %v476_v8 }
  0xb1   : > { %v302_v10 = vpop.f32.mrf.mxu0 }
  0xb2   : > { %v303_v11 = vadd.f32 %v543_v9, %v302_v10 }
  0xb4   : > { %307 = vst [vmem:[%s202_s11] sm:$0xff] %v303_v11 }
  0xb9   : > { %v304_v12 = vpop.f32.mrf.mxu0 }
  0xba   : > { %v305_v13 = vadd.f32 %v543_v9, %v304_v12 }
  0xbc   : > { %308 = vst [vmem:[%s202_s11 + $0x8] sm:$0xff] %v305_v13 }
  0xbd   : > { %571 = shalt.err (!%p568_p5)
}
  0xbe   : > { %s624_s30 = smov 128   ;;  %s625_s5 = smov 8  }
  0xbf   : > { %486 = dma.vmem_to_hbm [thread:$0]  (%p686_p4), %s324_s18, 256, %s326_s19, %s310_s21, %s624_s30, %s624_s30, %s625_s5  }
  0xc0 PF: > { %p492_p6 = scmp.ge.s32.totalorder %s622_s17, 2  ;;  %s340_s6 = sand.u32 1, %s602_s12  }
  0xc1   : > { %s341_s8 = scalar_lea.sflag [#allocation3], %s340_s6 }
  0xc2   : > { %p489_p7 = pnand %p492_p6, %p693_p8 }
  0xc4   : > { %p490_p9 = pneg %p489_p7 }
  0xc6   : > { %597 = dma.done.wait (%p490_p9), %s341_s8, 256  }
  0xc7   : > { %599 = vsyncadd (%p490_p9), %s341_s8, 4294967040  ;;  %s16_s17 = sadd.s32 1, %s622_s17   ;;  %s775_s12 = smov %s606_s13 }
  0xc8   : > { %p13_p10 = scmp.ge.s32.totalorder %s16_s17, 4   ;;  %s776_s13 = smov %s610_s14 }
  0xc9   : > { %s777_s14 = smov %s699_s25  ;;  %s778_s15 = smov %s618_s16 }
  0xca   : > { %s779_s16 = smov %s781_s20  ;;  %15 = sbr.rel (!%p13_p10) target bundleno = 4 (0x4), region = 73 }
  0xcf   :  { %347 = vsyncpa [#allocation3], 1 }
  0xd0   :  { %349 = vsyncpa [#allocation3 + $0x1], 1 }

</bundles_post_ra>
